<compile_context>
chip_gen: v7x
topology: tpu7x:2x2x1
jax: 0.10.0
libtpu: 0.0.40
codegen_flags: <defaults>
</compile_context>

<pallas_src>
import functools

import jax
import jax.numpy as jnp
from jax.experimental import pallas as pl
from jax.experimental.pallas import tpu as pltpu

ALPHA = 0.25       # torchvision sigmoid_focal_loss default
GAMMA = 2.0        # torchvision sigmoid_focal_loss default (integer power 2)
SMOOTH = 0.1       # DiceLoss.smooth
LAMBDA = 3.0       # SoloLoss lambda
NUM_LEVELS = 5


def _solo_loss_kernel(cp_ref, ct_ref, mp_hbm, mt_hbm, loss_ref,
                      mp_buf, mt_buf, sem, *, n, c, w):
    # ---- start the mask-row DMAs first so they overlap the focal loss ------
    # Sources are (N, 5C, H*W) / (N, C, H*W) in HBM; the first W elements of
    # the trailing axis are exactly the h == 0 row of each (H, W) mask, so the
    # copy is a strided DMA (run of W per (n, channel) row).
    mp_cp = pltpu.make_async_copy(mp_hbm.at[:, :, pl.ds(0, w)], mp_buf, sem.at[0])
    mt_cp = pltpu.make_async_copy(mt_hbm.at[:, :, pl.ds(0, w)], mt_buf, sem.at[1])
    mp_cp.start()
    mt_cp.start()

    # ---- sigmoid_focal_loss(cp, ct), mean per level, summed over levels ----
    # cp/ct: (N, 5C), channel axis is level-major (l*C + c).
    # sum(fl) / (N*C) == sum_l mean_l(fl) because each level occupies exactly
    # N*C elements of the (N, 5C) tile.
    cp = cp_ref[...].astype(jnp.float32)
    ct = ct_ref[...].astype(jnp.float32)

    e = jnp.exp(-jnp.abs(cp))                       # single EUP exp, reused
    ce = jnp.maximum(cp, 0.0) - cp * ct + jnp.log1p(e)
    p = jnp.where(cp >= 0.0, 1.0, e) / (1.0 + e)    # sigmoid(cp) from shared e
    p_t = p * ct + (1.0 - p) * (1.0 - ct)
    one_m = 1.0 - p_t
    alpha_t = ALPHA * ct + (1.0 - ALPHA) * (1.0 - ct)
    fl = alpha_t * ce * one_m * one_m               # gamma == 2
    class_loss_sum = jnp.sum(fl) * (1.0 / float(n * c))

    # Selection threshold applied to raw logits (matches the PyTorch module).
    sel = (cp > 0.5).astype(jnp.float32)            # (N, 5C)

    # ---- per-level Dice on the h == 0 rows ---------------------------------
    mp_cp.wait()
    mt_cp.wait()

    mt = mt_buf[...].astype(jnp.float32)            # (N, C, W), loaded once
    t_sum = jnp.sum(mt, axis=-1)                    # (N, C)

    # Stream mask_pred one level at a time (keeps ~C/5 of the tile live) and
    # keep the masked partials as (N, C) arrays; all cross-lane reductions and
    # the 5 dice divides happen once, vectorized, after the loop.
    inter_parts = []
    denom_parts = []
    for l in range(NUM_LEVELS):                     # static 5-way unroll
        mp_l = mp_buf[:, l * c:(l + 1) * c, :].astype(jnp.float32)   # (N, C, W)
        sel_l = sel[:, l * c:(l + 1) * c]                            # (N, C)
        prod_ws = jnp.sum(mp_l * mt, axis=-1)                        # (N, C)
        psum_ws = jnp.sum(mp_l, axis=-1)                             # (N, C)
        inter_parts.append(prod_ws * sel_l)
        denom_parts.append((psum_ws + t_sum) * sel_l)

    inter_st = jnp.stack(inter_parts)               # (5, N, C)
    denom_st = jnp.stack(denom_parts)               # (5, N, C)
    inter_v = jnp.sum(jnp.sum(inter_st, axis=2), axis=1, keepdims=True)   # (5, 1)
    denom_v = jnp.sum(jnp.sum(denom_st, axis=2), axis=1, keepdims=True)   # (5, 1)
    dsc = (2.0 * inter_v + SMOOTH) / (denom_v + SMOOTH)   # exact divide
    mask_loss_sum = LAMBDA * (float(NUM_LEVELS) - jnp.sum(dsc))

    loss_ref[0] = (class_loss_sum + mask_loss_sum) * (1.0 / float(NUM_LEVELS))


@jax.jit
def solo_loss(mask_pred, cls_pred, mask_true, cls_true):
    n, c, h, w = mask_true.shape
    assert mask_pred.shape == (n, NUM_LEVELS * c, h, w)
    assert cls_pred.shape == (NUM_LEVELS * n, c)
    assert cls_true.shape == (n, c)

    # h == 0 row selection is done by the in-kernel DMA: metadata-only reshape
    # of the trailing (H, W) -> (H*W,); the kernel copies the first W elements
    # of each (n, channel) row straight from HBM.  No wrapper-side slice pass.
    mp_in = mask_pred.reshape(n, NUM_LEVELS * c, h * w)
    mt_in = mask_true.reshape(n, c, h * w)

    # Tiny (~KB) relayouts so class logits/targets line up elementwise with the
    # level-major mask channel axis; fused by XLA under jit.
    cp_nc = jnp.transpose(cls_pred.reshape(NUM_LEVELS, n, c),
                          (1, 0, 2)).reshape(n, NUM_LEVELS * c)
    ct_nc = jnp.tile(cls_true, (1, NUM_LEVELS))

    kernel = functools.partial(_solo_loss_kernel, n=n, c=c, w=w)
    out = pl.pallas_call(
        kernel,
        out_shape=jax.ShapeDtypeStruct((1,), jnp.float32),
        grid_spec=pltpu.PrefetchScalarGridSpec(
            num_scalar_prefetch=0,
            grid=(1,),
            in_specs=[
                pl.BlockSpec((n, NUM_LEVELS * c), lambda i: (0, 0)),  # cls logits
                pl.BlockSpec((n, NUM_LEVELS * c), lambda i: (0, 0)),  # cls targets
                pl.BlockSpec(memory_space=pl.ANY),                    # mask_pred (HBM)
                pl.BlockSpec(memory_space=pl.ANY),                    # mask_true (HBM)
            ],
            out_specs=pl.BlockSpec(memory_space=pltpu.MemorySpace.SMEM),
            scratch_shapes=[
                pltpu.VMEM((n, NUM_LEVELS * c, w), mask_pred.dtype),  # h==0 rows
                pltpu.VMEM((n, c, w), mask_true.dtype),               # h==0 rows
                pltpu.SemaphoreType.DMA((2,)),
            ],
        ),
        compiler_params=pltpu.CompilerParams(
            dimension_semantics=("arbitrary",)),
    )(cp_nc, ct_nc, mp_in, mt_in)
    return out[0]


def solo_loss_ref(mask_pred, cls_pred, mask_true, cls_true):
    """Pure-JAX reference mirroring the PyTorch forward."""
    n, c, h, w = mask_true.shape
    total = jnp.float32(0.0)
    for i in range(NUM_LEVELS):
        mp = mask_pred[:, i * c:(i + 1) * c]          # (N, C, H, W)
        cp = cls_pred[i * n:(i + 1) * n]              # (N, C)
        p = jax.nn.sigmoid(cp)
        ce = jnp.maximum(cp, 0.0) - cp * cls_true + jnp.log1p(jnp.exp(-jnp.abs(cp)))
        pt = p * cls_true + (1.0 - p) * (1.0 - cls_true)
        at = ALPHA * cls_true + (1.0 - ALPHA) * (1.0 - cls_true)
        class_loss = jnp.mean(at * ce * (1.0 - pt) ** 2)
        sel = (cp > 0.5).astype(jnp.float32)[:, :, None]
        yp = mp[:, :, 0, :]
        yt = mask_true[:, :, 0, :]
        inter = jnp.sum(yp * yt * sel)
        sp = jnp.sum(yp * sel)
        st = jnp.sum(yt * sel)
        dsc = (2.0 * inter + SMOOTH) / (sp + st + SMOOTH)
        total = total + class_loss + LAMBDA * (1.0 - dsc)
    return total / NUM_LEVELS


if __name__ == "__main__":
    N, C, H, W = 4, 8, 8, 128
    key = jax.random.PRNGKey(0)
    k1, k2, k3, k4 = jax.random.split(key, 4)

    mask_pred = jax.random.uniform(k1, (N, 5 * C, H, W), jnp.float32)
    cls_pred = jax.random.normal(k2, (5 * N, C), jnp.float32)
    mask_true = jax.random.bernoulli(k3, 0.3, (N, C, H, W)).astype(jnp.float32)
    cls_true = jax.random.bernoulli(k4, 0.2, (N, C)).astype(jnp.float32)

    out = solo_loss(mask_pred, cls_pred, mask_true, cls_true)
    out = jax.block_until_ready(out)

    ref = solo_loss_ref(mask_pred, cls_pred, mask_true, cls_true)
    assert jnp.allclose(out, ref, rtol=1e-4, atol=1e-5), (out, ref)
    print("KERNEL_OK")
</pallas_src>

<mosaic_0001>
module attributes {stable_mosaic.version = 11 : i64} {
  func.func @_solo_loss_kernel(%arg0: i32, %arg1: memref<4x40xf32, #tpu.memory_space<vmem>>, %arg2: memref<4x40xf32, #tpu.memory_space<vmem>>, %arg3: memref<4x40x1024xf32, #tpu.memory_space<any>>, %arg4: memref<4x8x1024xf32, #tpu.memory_space<any>>, %arg5: memref<1xf32, #tpu.memory_space<smem>>, %arg6: memref<4x40x128xf32, #tpu.memory_space<vmem>>, %arg7: memref<4x8x128xf32, #tpu.memory_space<vmem>>, %arg8: memref<2x!tpu.dma_semaphore, #tpu.memory_space<semaphore_mem>>) attributes {dimension_semantics = [#tpu.dimension_semantics<arbitrary>], iteration_bounds = array<i64: 1>, scalar_prefetch = 0 : i64, scratch_operands = 3 : i64, tpu.core_type = #tpu.core_type<tc>, window_params = [{pipeline_mode = #tpu.pipeline_mode<synchronous>, transform_indices = @transform_0, window_bounds = array<i64: 4, 40>}, {pipeline_mode = #tpu.pipeline_mode<synchronous>, transform_indices = @transform_1, window_bounds = array<i64: 4, 40>}, {}, {}, {transform_indices = @transform_4, window_bounds = array<i64: 1>}]} {
    %c0_i32 = arith.constant 0 : i32
    %c0_i32_0 = arith.constant 0 : i32
    %c0_i32_1 = arith.constant 0 : i32
    %c0_i32_2 = arith.constant 0 : i32
    %0 = tpu.memref_slice %arg3[%c0_i32_0, %c0_i32_1, %c0_i32_2] : memref<4x40x1024xf32, #tpu.memory_space<any>> -> memref<4x40x128xf32, #tpu.memory_space<any>>
    %1 = tpu.memref_slice %arg8[%c0_i32] : memref<2x!tpu.dma_semaphore, #tpu.memory_space<semaphore_mem>> -> memref<1x!tpu.dma_semaphore, #tpu.memory_space<semaphore_mem>>
    %2 = tpu.memref_squeeze %1 : memref<1x!tpu.dma_semaphore, #tpu.memory_space<semaphore_mem>> -> memref<!tpu.dma_semaphore, #tpu.memory_space<semaphore_mem>>
    tpu.enqueue_dma source(%0 : memref<4x40x128xf32, #tpu.memory_space<any>>) target(%arg6 : memref<4x40x128xf32, #tpu.memory_space<vmem>>) target_semaphore(%2 : memref<!tpu.dma_semaphore, #tpu.memory_space<semaphore_mem>>)
    %c1_i32 = arith.constant 1 : i32
    %c0_i32_3 = arith.constant 0 : i32
    %c0_i32_4 = arith.constant 0 : i32
    %c0_i32_5 = arith.constant 0 : i32
    %3 = tpu.memref_slice %arg4[%c0_i32_3, %c0_i32_4, %c0_i32_5] : memref<4x8x1024xf32, #tpu.memory_space<any>> -> memref<4x8x128xf32, #tpu.memory_space<any>>
    %4 = tpu.memref_slice %arg8[%c1_i32] : memref<2x!tpu.dma_semaphore, #tpu.memory_space<semaphore_mem>> -> memref<1x!tpu.dma_semaphore, #tpu.memory_space<semaphore_mem>>
    %5 = tpu.memref_squeeze %4 : memref<1x!tpu.dma_semaphore, #tpu.memory_space<semaphore_mem>> -> memref<!tpu.dma_semaphore, #tpu.memory_space<semaphore_mem>>
    tpu.enqueue_dma source(%3 : memref<4x8x128xf32, #tpu.memory_space<any>>) target(%arg7 : memref<4x8x128xf32, #tpu.memory_space<vmem>>) target_semaphore(%5 : memref<!tpu.dma_semaphore, #tpu.memory_space<semaphore_mem>>)
    %c0 = arith.constant 0 : index
    %c0_6 = arith.constant 0 : index
    %6 = vector.load %arg1[%c0, %c0_6] : memref<4x40xf32, #tpu.memory_space<vmem>>, vector<4x40xf32>
    %c0_7 = arith.constant 0 : index
    %c0_8 = arith.constant 0 : index
    %7 = vector.load %arg2[%c0_7, %c0_8] : memref<4x40xf32, #tpu.memory_space<vmem>>, vector<4x40xf32>
    %8 = math.absf %6 : vector<4x40xf32>
    %cst = arith.constant 0.000000e+00 : f32
    %9 = vector.broadcast %cst : f32 to vector<4x40xf32>
    %10 = arith.subf %9, %8 : vector<4x40xf32>
    %11 = math.exp %10 : vector<4x40xf32>
    %cst_9 = arith.constant 0.000000e+00 : f32
    %12 = vector.broadcast %cst_9 : f32 to vector<4x40xf32>
    %13 = arith.maximumf %6, %12 : vector<4x40xf32>
    %14 = arith.mulf %6, %7 : vector<4x40xf32>
    %15 = arith.subf %13, %14 : vector<4x40xf32>
    %16 = math.log1p %11 : vector<4x40xf32>
    %17 = arith.addf %15, %16 : vector<4x40xf32>
    %cst_10 = arith.constant 0.000000e+00 : f32
    %18 = vector.broadcast %cst_10 : f32 to vector<4x40xf32>
    %19 = arith.cmpf oge, %6, %18 : vector<4x40xf32>
    %cst_11 = arith.constant 1.000000e+00 : f32
    %20 = vector.broadcast %cst_11 : f32 to vector<4x40xf32>
    %21 = arith.select %19, %20, %11 : vector<4x40xi1>, vector<4x40xf32>
    %cst_12 = arith.constant 1.000000e+00 : f32
    %22 = vector.broadcast %cst_12 : f32 to vector<4x40xf32>
    %23 = arith.addf %22, %11 : vector<4x40xf32>
    %24 = arith.divf %21, %23 : vector<4x40xf32>
    %25 = arith.mulf %24, %7 : vector<4x40xf32>
    %cst_13 = arith.constant 1.000000e+00 : f32
    %26 = vector.broadcast %cst_13 : f32 to vector<4x40xf32>
    %27 = arith.subf %26, %24 : vector<4x40xf32>
    %cst_14 = arith.constant 1.000000e+00 : f32
    %28 = vector.broadcast %cst_14 : f32 to vector<4x40xf32>
    %29 = arith.subf %28, %7 : vector<4x40xf32>
    %30 = arith.mulf %27, %29 : vector<4x40xf32>
    %31 = arith.addf %25, %30 : vector<4x40xf32>
    %cst_15 = arith.constant 1.000000e+00 : f32
    %32 = vector.broadcast %cst_15 : f32 to vector<4x40xf32>
    %33 = arith.subf %32, %31 : vector<4x40xf32>
    %cst_16 = arith.constant 2.500000e-01 : f32
    %34 = vector.broadcast %cst_16 : f32 to vector<4x40xf32>
    %35 = arith.mulf %34, %7 : vector<4x40xf32>
    %cst_17 = arith.constant 1.000000e+00 : f32
    %36 = vector.broadcast %cst_17 : f32 to vector<4x40xf32>
    %37 = arith.subf %36, %7 : vector<4x40xf32>
    %cst_18 = arith.constant 7.500000e-01 : f32
    %38 = vector.broadcast %cst_18 : f32 to vector<4x40xf32>
    %39 = arith.mulf %38, %37 : vector<4x40xf32>
    %40 = arith.addf %35, %39 : vector<4x40xf32>
    %41 = arith.mulf %40, %17 : vector<4x40xf32>
    %42 = arith.mulf %41, %33 : vector<4x40xf32>
    %43 = arith.mulf %42, %33 : vector<4x40xf32>
    %44 = vector.shape_cast %43 : vector<4x40xf32> to vector<1x4x40xf32>
    %cst_19 = arith.constant dense<0.000000e+00> : vector<1xf32>
    %45 = vector.multi_reduction <add>, %44, %cst_19 [1, 2] : vector<1x4x40xf32> to vector<1xf32>
    %46 = vector.shape_cast %45 : vector<1xf32> to vector<1x1x1xf32>
    %47 = vector.extract %46[0, 0, 0] : f32 from vector<1x1x1xf32>
    %cst_20 = arith.constant 3.125000e-02 : f32
    %48 = arith.mulf %47, %cst_20 : f32
    %cst_21 = arith.constant 5.000000e-01 : f32
    %49 = vector.broadcast %cst_21 : f32 to vector<4x40xf32>
    %50 = arith.cmpf ogt, %6, %49 : vector<4x40xf32>
    %51 = arith.extui %50 : vector<4x40xi1> to vector<4x40xi32>
    %52 = arith.sitofp %51 : vector<4x40xi32> to vector<4x40xf32>
    %c0_i32_22 = arith.constant 0 : i32
    %c0_i32_23 = arith.constant 0 : i32
    %c0_i32_24 = arith.constant 0 : i32
    %c0_i32_25 = arith.constant 0 : i32
    %53 = tpu.memref_slice %arg3[%c0_i32_23, %c0_i32_24, %c0_i32_25] : memref<4x40x1024xf32, #tpu.memory_space<any>> -> memref<4x40x128xf32, #tpu.memory_space<any>>
    %54 = tpu.memref_slice %arg8[%c0_i32_22] : memref<2x!tpu.dma_semaphore, #tpu.memory_space<semaphore_mem>> -> memref<1x!tpu.dma_semaphore, #tpu.memory_space<semaphore_mem>>
    %55 = tpu.memref_squeeze %54 : memref<1x!tpu.dma_semaphore, #tpu.memory_space<semaphore_mem>> -> memref<!tpu.dma_semaphore, #tpu.memory_space<semaphore_mem>>
    tpu.wait_dma2 semaphore(%55 : memref<!tpu.dma_semaphore, #tpu.memory_space<semaphore_mem>>) src(%53 : memref<4x40x128xf32, #tpu.memory_space<any>>) dst(%arg6 : memref<4x40x128xf32, #tpu.memory_space<vmem>>)
    %c1_i32_26 = arith.constant 1 : i32
    %c0_i32_27 = arith.constant 0 : i32
    %c0_i32_28 = arith.constant 0 : i32
    %c0_i32_29 = arith.constant 0 : i32
    %56 = tpu.memref_slice %arg4[%c0_i32_27, %c0_i32_28, %c0_i32_29] : memref<4x8x1024xf32, #tpu.memory_space<any>> -> memref<4x8x128xf32, #tpu.memory_space<any>>
    %57 = tpu.memref_slice %arg8[%c1_i32_26] : memref<2x!tpu.dma_semaphore, #tpu.memory_space<semaphore_mem>> -> memref<1x!tpu.dma_semaphore, #tpu.memory_space<semaphore_mem>>
    %58 = tpu.memref_squeeze %57 : memref<1x!tpu.dma_semaphore, #tpu.memory_space<semaphore_mem>> -> memref<!tpu.dma_semaphore, #tpu.memory_space<semaphore_mem>>
    tpu.wait_dma2 semaphore(%58 : memref<!tpu.dma_semaphore, #tpu.memory_space<semaphore_mem>>) src(%56 : memref<4x8x128xf32, #tpu.memory_space<any>>) dst(%arg7 : memref<4x8x128xf32, #tpu.memory_space<vmem>>)
    %c0_30 = arith.constant 0 : index
    %c0_31 = arith.constant 0 : index
    %c0_32 = arith.constant 0 : index
    %59 = vector.load %arg7[%c0_30, %c0_31, %c0_32] : memref<4x8x128xf32, #tpu.memory_space<vmem>>, vector<4x8x128xf32>
    %cst_33 = arith.constant dense<0.000000e+00> : vector<4x8xf32>
    %60 = vector.multi_reduction <add>, %59, %cst_33 [2] : vector<4x8x128xf32> to vector<4x8xf32>
    %c0_34 = arith.constant 0 : index
    %c0_35 = arith.constant 0 : index
    %c0_36 = arith.constant 0 : index
    %61 = vector.load %arg6[%c0_34, %c0_35, %c0_36] : memref<4x40x128xf32, #tpu.memory_space<vmem>>, vector<4x8x128xf32>
    %62 = vector.extract_strided_slice %52 {offsets = [0, 0], sizes = [4, 8], strides = [1, 1]} : vector<4x40xf32> to vector<4x8xf32>
    %63 = arith.mulf %61, %59 : vector<4x8x128xf32>
    %cst_37 = arith.constant dense<0.000000e+00> : vector<4x8xf32>
    %64 = vector.multi_reduction <add>, %63, %cst_37 [2] : vector<4x8x128xf32> to vector<4x8xf32>
    %cst_38 = arith.constant dense<0.000000e+00> : vector<4x8xf32>
    %65 = vector.multi_reduction <add>, %61, %cst_38 [2] : vector<4x8x128xf32> to vector<4x8xf32>
    %66 = arith.mulf %64, %62 : vector<4x8xf32>
    %67 = arith.addf %65, %60 : vector<4x8xf32>
    %68 = arith.mulf %67, %62 : vector<4x8xf32>
    %c0_39 = arith.constant 0 : index
    %c8 = arith.constant 8 : index
    %c0_40 = arith.constant 0 : index
    %69 = vector.load %arg6[%c0_39, %c8, %c0_40] : memref<4x40x128xf32, #tpu.memory_space<vmem>>, vector<4x8x128xf32>
    %70 = vector.extract_strided_slice %52 {offsets = [0, 8], sizes = [4, 8], strides = [1, 1]} : vector<4x40xf32> to vector<4x8xf32>
    %71 = arith.mulf %69, %59 : vector<4x8x128xf32>
    %cst_41 = arith.constant dense<0.000000e+00> : vector<4x8xf32>
    %72 = vector.multi_reduction <add>, %71, %cst_41 [2] : vector<4x8x128xf32> to vector<4x8xf32>
    %cst_42 = arith.constant dense<0.000000e+00> : vector<4x8xf32>
    %73 = vector.multi_reduction <add>, %69, %cst_42 [2] : vector<4x8x128xf32> to vector<4x8xf32>
    %74 = arith.mulf %72, %70 : vector<4x8xf32>
    %75 = arith.addf %73, %60 : vector<4x8xf32>
    %76 = arith.mulf %75, %70 : vector<4x8xf32>
    %c0_43 = arith.constant 0 : index
    %c16 = arith.constant 16 : index
    %c0_44 = arith.constant 0 : index
    %77 = vector.load %arg6[%c0_43, %c16, %c0_44] : memref<4x40x128xf32, #tpu.memory_space<vmem>>, vector<4x8x128xf32>
    %78 = vector.extract_strided_slice %52 {offsets = [0, 16], sizes = [4, 8], strides = [1, 1]} : vector<4x40xf32> to vector<4x8xf32>
    %79 = arith.mulf %77, %59 : vector<4x8x128xf32>
    %cst_45 = arith.constant dense<0.000000e+00> : vector<4x8xf32>
    %80 = vector.multi_reduction <add>, %79, %cst_45 [2] : vector<4x8x128xf32> to vector<4x8xf32>
    %cst_46 = arith.constant dense<0.000000e+00> : vector<4x8xf32>
    %81 = vector.multi_reduction <add>, %77, %cst_46 [2] : vector<4x8x128xf32> to vector<4x8xf32>
    %82 = arith.mulf %80, %78 : vector<4x8xf32>
    %83 = arith.addf %81, %60 : vector<4x8xf32>
    %84 = arith.mulf %83, %78 : vector<4x8xf32>
    %c0_47 = arith.constant 0 : index
    %c24 = arith.constant 24 : index
    %c0_48 = arith.constant 0 : index
    %85 = vector.load %arg6[%c0_47, %c24, %c0_48] : memref<4x40x128xf32, #tpu.memory_space<vmem>>, vector<4x8x128xf32>
    %86 = vector.extract_strided_slice %52 {offsets = [0, 24], sizes = [4, 8], strides = [1, 1]} : vector<4x40xf32> to vector<4x8xf32>
    %87 = arith.mulf %85, %59 : vector<4x8x128xf32>
    %cst_49 = arith.constant dense<0.000000e+00> : vector<4x8xf32>
    %88 = vector.multi_reduction <add>, %87, %cst_49 [2] : vector<4x8x128xf32> to vector<4x8xf32>
    %cst_50 = arith.constant dense<0.000000e+00> : vector<4x8xf32>
    %89 = vector.multi_reduction <add>, %85, %cst_50 [2] : vector<4x8x128xf32> to vector<4x8xf32>
    %90 = arith.mulf %88, %86 : vector<4x8xf32>
    %91 = arith.addf %89, %60 : vector<4x8xf32>
    %92 = arith.mulf %91, %86 : vector<4x8xf32>
    %c0_51 = arith.constant 0 : index
    %c32 = arith.constant 32 : index
    %c0_52 = arith.constant 0 : index
    %93 = vector.load %arg6[%c0_51, %c32, %c0_52] : memref<4x40x128xf32, #tpu.memory_space<vmem>>, vector<4x8x128xf32>
    %94 = vector.extract_strided_slice %52 {offsets = [0, 32], sizes = [4, 8], strides = [1, 1]} : vector<4x40xf32> to vector<4x8xf32>
    %95 = arith.mulf %93, %59 : vector<4x8x128xf32>
    %cst_53 = arith.constant dense<0.000000e+00> : vector<4x8xf32>
    %96 = vector.multi_reduction <add>, %95, %cst_53 [2] : vector<4x8x128xf32> to vector<4x8xf32>
    %cst_54 = arith.constant dense<0.000000e+00> : vector<4x8xf32>
    %97 = vector.multi_reduction <add>, %93, %cst_54 [2] : vector<4x8x128xf32> to vector<4x8xf32>
    %98 = arith.mulf %96, %94 : vector<4x8xf32>
    %99 = arith.addf %97, %60 : vector<4x8xf32>
    %100 = arith.mulf %99, %94 : vector<4x8xf32>
    %101 = vector.shape_cast %66 : vector<4x8xf32> to vector<1x4x8xf32>
    %102 = vector.shape_cast %74 : vector<4x8xf32> to vector<1x4x8xf32>
    %103 = vector.shape_cast %82 : vector<4x8xf32> to vector<1x4x8xf32>
    %104 = vector.shape_cast %90 : vector<4x8xf32> to vector<1x4x8xf32>
    %105 = vector.shape_cast %98 : vector<4x8xf32> to vector<1x4x8xf32>
    %106 = tpu.concatenate %101, %102, %103, %104, %105 in 0 : vector<1x4x8xf32>, vector<1x4x8xf32>, vector<1x4x8xf32>, vector<1x4x8xf32>, vector<1x4x8xf32> -> vector<5x4x8xf32>
    %107 = vector.shape_cast %68 : vector<4x8xf32> to vector<1x4x8xf32>
    %108 = vector.shape_cast %76 : vector<4x8xf32> to vector<1x4x8xf32>
    %109 = vector.shape_cast %84 : vector<4x8xf32> to vector<1x4x8xf32>
    %110 = vector.shape_cast %92 : vector<4x8xf32> to vector<1x4x8xf32>
    %111 = vector.shape_cast %100 : vector<4x8xf32> to vector<1x4x8xf32>
    %112 = tpu.concatenate %107, %108, %109, %110, %111 in 0 : vector<1x4x8xf32>, vector<1x4x8xf32>, vector<1x4x8xf32>, vector<1x4x8xf32>, vector<1x4x8xf32> -> vector<5x4x8xf32>
    %cst_55 = arith.constant dense<0.000000e+00> : vector<5x4xf32>
    %113 = vector.multi_reduction <add>, %106, %cst_55 [2] : vector<5x4x8xf32> to vector<5x4xf32>
    %cst_56 = arith.constant dense<0.000000e+00> : vector<5xf32>
    %114 = vector.multi_reduction <add>, %113, %cst_56 [1] : vector<5x4xf32> to vector<5xf32>
    %115 = vector.shape_cast %114 : vector<5xf32> to vector<5x1xf32>
    %cst_57 = arith.constant dense<0.000000e+00> : vector<5x4xf32>
    %116 = vector.multi_reduction <add>, %112, %cst_57 [2] : vector<5x4x8xf32> to vector<5x4xf32>
    %cst_58 = arith.constant dense<0.000000e+00> : vector<5xf32>
    %117 = vector.multi_reduction <add>, %116, %cst_58 [1] : vector<5x4xf32> to vector<5xf32>
    %118 = vector.shape_cast %117 : vector<5xf32> to vector<5x1xf32>
    %cst_59 = arith.constant 2.000000e+00 : f32
    %119 = vector.broadcast %cst_59 : f32 to vector<5x1xf32>
    %120 = arith.mulf %119, %115 : vector<5x1xf32>
    %cst_60 = arith.constant 1.000000e-01 : f32
    %121 = vector.broadcast %cst_60 : f32 to vector<5x1xf32>
    %122 = arith.addf %120, %121 : vector<5x1xf32>
    %cst_61 = arith.constant 1.000000e-01 : f32
    %123 = vector.broadcast %cst_61 : f32 to vector<5x1xf32>
    %124 = arith.addf %118, %123 : vector<5x1xf32>
    %125 = arith.divf %122, %124 : vector<5x1xf32>
    %126 = vector.shape_cast %125 : vector<5x1xf32> to vector<1x5x1xf32>
    %cst_62 = arith.constant dense<0.000000e+00> : vector<1xf32>
    %127 = vector.multi_reduction <add>, %126, %cst_62 [1, 2] : vector<1x5x1xf32> to vector<1xf32>
    %128 = vector.shape_cast %127 : vector<1xf32> to vector<1x1x1xf32>
    %129 = vector.extract %128[0, 0, 0] : f32 from vector<1x1x1xf32>
    %cst_63 = arith.constant 5.000000e+00 : f32
    %130 = arith.subf %cst_63, %129 : f32
    %cst_64 = arith.constant 3.000000e+00 : f32
    %131 = arith.mulf %cst_64, %130 : f32
    %132 = arith.addf %48, %131 : f32
    %cst_65 = arith.constant 2.000000e-01 : f32
    %133 = arith.mulf %132, %cst_65 : f32
    %c0_66 = arith.constant 0 : index
    %134 = memref.load %arg5[%c0_66] : memref<1xf32, #tpu.memory_space<smem>>
    memref.store %133, %arg5[%c0_66] : memref<1xf32, #tpu.memory_space<smem>>
    return
  }
  func.func @transform_0(%arg0: i32) -> (i32, i32) {
    %c0_i32 = arith.constant 0 : i32
    %c0_i32_0 = arith.constant 0 : i32
    %c0_i32_1 = arith.constant 0 : i32
    return %c0_i32, %c0_i32_0 : i32, i32
  }
  func.func @transform_1(%arg0: i32) -> (i32, i32) {
    %c0_i32 = arith.constant 0 : i32
    %c0_i32_0 = arith.constant 0 : i32
    %c0_i32_1 = arith.constant 0 : i32
    return %c0_i32, %c0_i32_0 : i32, i32
  }
  func.func @transform_4(%arg0: i32) -> i32 {
    %c0_i32 = arith.constant 0 : i32
    %c0_i32_0 = arith.constant 0 : i32
    return %c0_i32 : i32
  }
}

</mosaic_0001>

<bundles_post_ra>
// kernel: solo_loss.1
= control target key start
LH: loop header
LB: loop body
LE: loop exit
PB: predicated region body
PF: predicated region fallthrough
CT: control target
= control target key end

     0   :  { %9 = vsyncpa [#allocation6], 0  ;;  %s1605_s0 = inlined_call_operand.vmem [shape: f32[4,40], index: 0, kind: input, shape index: {}]   ;;  %s1606_s1 = inlined_call_operand.vmem [shape: f32[4,40], index: 1, kind: input, shape index: {}]   ;;  %s1607_s2 = inlined_call_operand.vmem [shape: f32[4,40,1024], index: 2, kind: input, shape index: {}]   ;;  %s1608_s3 = inlined_call_operand.vmem [shape: f32[4,8,1024], index: 3, kind: input, shape index: {}]   ;;  %s1609_s4 = inlined_call_operand.hbm [shape: f32[1], index: 4, kind: output, shape index: {}]  }
   0x1   :  { %v1147_v0 = vld [vmem:[%s1607_s2] sm:$0xff] }
   0x2   :  { %v1152_v1 = vld [vmem:[%s1607_s2 + $0x40] sm:$0xff] }
   0x3   :  { %v1157_v2 = vld [vmem:[%s1607_s2 + $0x80] sm:$0xff] }
   0x4   :  { %v1162_v3 = vld [vmem:[%s1607_s2 + $0xc0] sm:$0xff] }
   0x5   :  { %v1167_v4 = vld [vmem:[%s1607_s2 + $0x100] sm:$0xff] }
   0x6   :  { %v1172_v5 = vld [vmem:[%s1607_s2 + $0x140] sm:$0xff] }
   0x7   :  { %v1177_v6 = vld [vmem:[%s1607_s2 + $0x180] sm:$0xff] }
   0x8   :  { %v1182_v7 = vld [vmem:[%s1607_s2 + $0x1c0] sm:$0xff] }
   0x9   :  { %v1187_v8 = vld [vmem:[%s1607_s2 + $0x200] sm:$0xff] }
   0xa   :  { %v1192_v9 = vld [vmem:[%s1607_s2 + $0x240] sm:$0xff] }
   0xb   :  { %v1197_v10 = vld [vmem:[%s1607_s2 + $0x280] sm:$0xff] }
   0xc   :  { %v1202_v11 = vld [vmem:[%s1607_s2 + $0x2c0] sm:$0xff] }
   0xd   :  { %v1207_v12 = vld [vmem:[%s1607_s2 + $0x300] sm:$0xff] }
   0xe   :  { %v1212_v13 = vld [vmem:[%s1607_s2 + $0x340] sm:$0xff] }
   0xf   :  { %v1217_v14 = vld [vmem:[%s1607_s2 + $0x380] sm:$0xff] }
  0x10   :  { %v1222_v15 = vld [vmem:[%s1607_s2 + $0x3c0] sm:$0xff] }
  0x11   :  { %v1227_v16 = vld [vmem:[%s1607_s2 + $0x400] sm:$0xff] }
  0x12   :  { %v1232_v17 = vld [vmem:[%s1607_s2 + $0x440] sm:$0xff] }
  0x13   :  { %v1237_v18 = vld [vmem:[%s1607_s2 + $0x480] sm:$0xff] }
  0x14   :  { %v1242_v19 = vld [vmem:[%s1607_s2 + $0x4c0] sm:$0xff] }
  0x15   :  { %131 = vsyncadd [#allocation4], 2560  ;;  %v1247_v20 = vld [vmem:[%s1608_s3] sm:$0xff] }
  0x16   :  { %v1252_v21 = vld [vmem:[%s1608_s3 + $0x40] sm:$0xff] }
  0x17   :  { %v1257_v22 = vld [vmem:[%s1608_s3 + $0x80] sm:$0xff] }
  0x18   :  { %v1262_v23 = vld [vmem:[%s1608_s3 + $0xc0] sm:$0xff] }
  0x19   :  { %186 = vsyncadd [#allocation4 + $0x1], 512  ;;  %v187_v24 = vld [vmem:[%s1605_s0] sm:$0xf]  ;;  %v1116_v27 = vmov 0.0   ;;  %vm223_vm3 = vcmask 322560  }
  0x1a   :  { %v189_v25 = vand.u32 2147483647, %v187_v24  ;;  %vm235_vm0 = vcmp.gt.f32.partialorder %v187_v24, 0.5  ;;  %v188_v33 = vld [vmem:[%s1606_s1] sm:$0xf]  ;;  %v193_v34 = vmax.f32 %v187_v24, 0.0 }
  0x1b   :  { %v1267_v28 = vsel %vm235_vm0, 1.0, %v1116_v27  ;;  %v194_v36 = vmul.f32 %v188_v33, %v187_v24  ;;  %vm206_vm1 = vcmp.ge.f32.partialorder %v187_v24, 0.0  ;;  %v213_v38 = vsub.f32 1.0, %v188_v33 }
  0x1c   :  { %v190_v26 = vsub.f32 0.0, %v189_v25  ;;  %v217_v43 = vmul.f32 0.25, %v188_v33 }
  0x1d   :  { %v195_v42 = vsub.f32 %v193_v34, %v194_v36  ;;  %v218_v44 = vmul.f32 0.75, %v213_v38 }
  0x1e   :  { %v191_v29 = vmul.f32 1.442695, %v190_v26 }
  0x1f   :  { %v219_v52 = vadd.f32 %v218_v44, %v217_v43 }
  0x20   :  { %1090 = vpow2.f32 %v191_v29 }
  0x2a   :  { %v1091_v30 = vpop.eup %1090 }
  0x2b   :  { %v196_v31 = vadd.f32 1.0, %v1091_v30  ;;  %v199_v32 = vmul.f32 -0.5, %v1091_v30  ;;  %v202_v37 = vand.u32 2147483647, %v1091_v30  ;;  %v207_v40 = vsel %vm206_vm1, 1.0, %v1091_v30 }
  0x2d   :  { %1092 = vlog2.f32 %v196_v31  ;;  %v200_v35 = vadd.f32 1.0, %v199_v32  ;;  %vm203_vm2 = vcmp.lt.f32.partialorder %v202_v37, 0.0004427343 }
  0x2e   :  { %1094 = vrcp.f32 %v196_v31 }
  0x2f   :  { %v201_v39 = vmul.f32 %v1091_v30, %v200_v35 }
  0x37   :  { %v1093_v41 = vpop.eup %1092 }
  0x38   :  { %v1095_v45 = vpop.eup %1094  ;;  %v198_v46 = vmul.f32 0.6931472, %v1093_v41 }
  0x39   :  { %v210_v47 = vmul.f32 %v1095_v45, %v207_v40 }
  0x3a   :  { %v204_v48 = vsel %vm203_vm2, %v201_v39, %v198_v46 }
  0x3b   :  { %v205_v49 = vadd.f32 %v204_v48, %v195_v42  ;;  %v211_v50 = vmul.f32 %v210_v47, %v188_v33  ;;  %v212_v51 = vsub.f32 1.0, %v210_v47 }
  0x3d   :  { %v214_v53 = vmul.f32 %v213_v38, %v212_v51  ;;  %v220_v55 = vmul.f32 %v219_v52, %v205_v49 }
  0x3f   :  { %v215_v54 = vadd.f32 %v214_v53, %v211_v50 }
  0x41   :  { %v216_v56 = vsub.f32 1.0, %v215_v54 }
  0x43   :  { %v221_v57 = vmul.f32 %v220_v55, %v216_v56 }
  0x45   :  { %v222_v58 = vmul.f32 %v221_v57, %v216_v56 }
  0x47   :  { %v224_v59 = vsel %vm223_vm3, %v222_v58, 0.0 }
  0x48   :  { %225 = vadd.xlane.f32.xlu0 %v224_v59 }
  0xd5   :  { %v226_v60 = vpop.xlane.xlu0 %225 }
  0xd6   :  { %v227_v61 = vrot.slane %v226_v60, 4 }
  0xd8   :  { %v228_v62 = vadd.f32 %v227_v61, %v226_v60 }
  0xda   :  { %v229_v63 = vrot.slane %v228_v62, 2 }
  0xdc   :  { %v230_v24 = vadd.f32 %v229_v63, %v228_v62 }
  0xde   :  { %v231_v25 = vrot.slane %v230_v24, 1 }
  0xe0   :  { %v232_v26 = vadd.f32 %v231_v25, %v230_v24 }
  0xe2   :  { %1083 = vpush %v232_v26 }
 0x113   :  { %s1272_s0 = spop %1083 }
 0x114   :  { %s234_s1 = smul.f32 0.03125, %s1272_s0 }
 0x115   :  { %1110 = dma.done.wait [#allocation4], 2560 }
 0x116   :  { %1111 = vsyncadd [#allocation4], 4294964736  ;;  %275 = vadd.xlane.f32.xlu1 %v1147_v0  ;;  %251 = vadd.xlane.f32.xlu0 %v1247_v20 }
 0x117   :  { %1112 = dma.done.wait [#allocation4 + $0x1], 512 }
 0x118   :  { %1113 = vsyncadd [#allocation4 + $0x1], 4294966784  ;;  %v284_v27 = vlaneseq  ;;  %v264_v32 = vmul.f32 %v1252_v21, %v1172_v5  ;;  %v263_v33 = vmul.f32 %v1247_v20, %v1147_v0  ;;  %v333_v34 = vmul.f32 %v1252_v21, %v1177_v6  ;;  %s1100_s20 = scalar_lea.hbm %s1609_s4, 16 }
 0x119   :  { %v332_v35 = vmul.f32 %v1247_v20, %v1152_v1  ;;  %v334_v36 = vmul.f32 %v1257_v22, %v1202_v11  ;;  %v265_v37 = vmul.f32 %v1257_v22, %v1197_v10  ;;  %v389_v0 = vmul.f32 %v1252_v21, %v1182_v7  ;;  %p1101_p0 = scmp.ne.s32.totalorder %s1609_s4, %s1100_s20  ;;  %p1104_p1 = scmp.lt.u32.totalorder %s1100_s20, %s1609_s4 }
 0x11a   :  { %277 = vadd.xlane.f32.xlu1 %v1172_v5  ;;  %253 = vadd.xlane.f32.xlu0 %v1252_v21  ;;  %v1279_v29 = vshrl.u32 %v284_v27, 7  ;;  %v633_v30 = vand.u32 127, %v284_v27  ;;  %v388_v5 = vmul.f32 %v1247_v20, %v1157_v2  ;;  %v503_v38 = vmul.f32 %v1262_v23, %v1242_v19 }
 0x11b   :  { %vm714_vm4 = vcmask 1041409   ;;  %vm716_vm5 = vcmask 1042434   ;;  %vm718_vm6 = vcmask 1043459   ;;  %vm737_vm7 = vcmask 60416   ;;  %p1106_p2 = pnand %p1104_p1, %p1101_p0 }
 0x11c   :  { %v1282_v31 = vsub.s32 %v633_v30, %v1279_v29  ;;  %vm781_vm8 = vcmask 1044484   ;;  %vm784_vm9 = vcmask 28672   ;;  %vm1021_vm10 = vcmask 4096  }
 0x11e   :  { %346 = vadd.xlane.f32.xlu1 %v1177_v6  ;;  %344 = vadd.xlane.f32.xlu0 %v1152_v1  ;;  %v335_v1 = vmul.f32 %v1262_v23, %v1227_v16  ;;  %v266_v6 = vmul.f32 %v1262_v23, %v1222_v15 }
 0x122   :  { %279 = vadd.xlane.f32.xlu1 %v1197_v10  ;;  %255 = vadd.xlane.f32.xlu0 %v1257_v22  ;;  %v444_v10 = vmul.f32 %v1247_v20, %v1162_v3 }
 0x126   :  { %400 = vadd.xlane.f32.xlu1 %v1157_v2  ;;  %348 = vadd.xlane.f32.xlu0 %v1202_v11  ;;  %v390_v11 = vmul.f32 %v1257_v22, %v1207_v12  ;;  %v391_v2 = vmul.f32 %v1262_v23, %v1232_v17 }
 0x12a   :  { %257 = vadd.xlane.f32.xlu1 %v1262_v23  ;;  %402 = vadd.xlane.f32.xlu0 %v1182_v7  ;;  %v445_v7 = vmul.f32 %v1252_v21, %v1187_v8 }
 0x12e   :  { %350 = vadd.xlane.f32.xlu1 %v1227_v16  ;;  %281 = vadd.xlane.f32.xlu0 %v1222_v15  ;;  %v500_v15 = vmul.f32 %v1247_v20, %v1167_v4  ;;  %v446_v16 = vmul.f32 %v1257_v22, %v1212_v13  ;;  %v1117_v20 = vmov 0  }
 0x12f   :  { %1096 = vset.pattern.permute.xlu0 %v1117_v20  ;;  %1097 = vset.pattern.permute.xlu1 %v1117_v20 }
 0x132   :  { %456 = vadd.xlane.f32.xlu1 %v1162_v3  ;;  %404 = vadd.xlane.f32.xlu0 %v1207_v12  ;;  %v447_v3 = vmul.f32 %v1262_v23, %v1237_v18  ;;  %v501_v12 = vmul.f32 %v1252_v21, %v1192_v9  ;;  %v307_v21 = vsub.s32 3, %v1279_v29 }
 0x136   :  { %406 = vadd.xlane.f32.xlu1 %v1232_v17  ;;  %458 = vadd.xlane.f32.xlu0 %v1187_v8  ;;  %v502_v8 = vmul.f32 %v1257_v22, %v1217_v14  ;;  %v286_v17 = vsub.s32 0, %v1279_v29  ;;  %v308_v22 = vrot.slane %v1267_v28, %v307_v21 }
 0x13a   :  { %512 = vadd.xlane.f32.xlu1 %v1167_v4  ;;  %460 = vadd.xlane.f32.xlu0 %v1212_v13  ;;  %v287_v4 = vrot.slane %v1267_v28, %v286_v17  ;;  %v293_v13 = vsub.s32 1, %v1279_v29 }
 0x13e   :  { %462 = vadd.xlane.f32.xlu1 %v1237_v18  ;;  %514 = vadd.xlane.f32.xlu0 %v1192_v9  ;;  %v294_v18 = vrot.slane %v1267_v28, %v293_v13  ;;  %v300_v9 = vsub.s32 2, %v1279_v29 }
 0x142   :  { %518 = vadd.xlane.f32.xlu1 %v1242_v19  ;;  %516 = vadd.xlane.f32.xlu0 %v1217_v14  ;;  %v301_v14 = vrot.slane %v1267_v28, %v300_v9 }
 0x146   :  { %269 = vadd.xlane.f32.xlu1 %v264_v32  ;;  %267 = vadd.xlane.f32.xlu0 %v263_v33 }
 0x14a   :  { %338 = vadd.xlane.f32.xlu1 %v333_v34  ;;  %336 = vadd.xlane.f32.xlu0 %v332_v35 }
 0x14e   :  { %340 = vadd.xlane.f32.xlu1 %v334_v36  ;;  %271 = vadd.xlane.f32.xlu0 %v265_v37 }
 0x152   :  { %394 = vadd.xlane.f32.xlu1 %v389_v0  ;;  %392 = vadd.xlane.f32.xlu0 %v388_v5 }
 0x156   :  { %342 = vadd.xlane.f32.xlu1 %v335_v1  ;;  %273 = vadd.xlane.f32.xlu0 %v266_v6 }
 0x15a   :  { %448 = vadd.xlane.f32.xlu1 %v444_v10  ;;  %396 = vadd.xlane.f32.xlu0 %v390_v11 }
 0x15e   :  { %398 = vadd.xlane.f32.xlu1 %v391_v2  ;;  %450 = vadd.xlane.f32.xlu0 %v445_v7 }
 0x162   :  { %504 = vadd.xlane.f32.xlu1 %v500_v15  ;;  %452 = vadd.xlane.f32.xlu0 %v446_v16 }
 0x166   :  { %454 = vadd.xlane.f32.xlu1 %v447_v3  ;;  %506 = vadd.xlane.f32.xlu0 %v501_v12 }
 0x16a   :  { %508 = vadd.xlane.f32.xlu0 %v502_v8 }
 0x177   :  { %289 = vbcast.lane.b32.xlu1 %v287_v4, 256 }
 0x17b   :  { %354 = vbcast.lane.b32.xlu1 %v287_v4, 264 }
 0x17f   :  { %358 = vbcast.lane.b32.xlu1 %v294_v18, 264 }
 0x180   :  { %296 = vbcast.lane.b32.xlu0 %v294_v18, 256 }
 0x184   :  { %303 = vbcast.lane.b32.xlu0 %v301_v14, 256 }
 0x188   :  { %362 = vbcast.lane.b32.xlu0 %v301_v14, 264 }
 0x18c   :  { %410 = vbcast.lane.b32.xlu0 %v287_v4, 272 }
 0x190   :  { %414 = vbcast.lane.b32.xlu0 %v294_v18, 272 }
 0x194   :  { %310 = vbcast.lane.b32.xlu0 %v308_v22, 256 }
 0x198   :  { %366 = vbcast.lane.b32.xlu0 %v308_v22, 264 }
 0x19c   :  { %418 = vbcast.lane.b32.xlu0 %v301_v14, 272 }
 0x1a0   :  { %466 = vbcast.lane.b32.xlu0 %v287_v4, 280 }
 0x1a3   :  { %v276_v39 = vpop.xlane.xlu1 %275  ;;  %v1352_v40 = vpop.xlane.xlu0 %251  ;;  %510 = vadd.xlane.f32.xlu1 %v503_v38 }
 0x1a4   :  { %470 = vbcast.lane.b32.xlu0 %v294_v18, 280  ;;  %v320_v2 = vadd.f32 %v276_v39, %v1352_v40 }
 0x1a7   :  { %v278_v41 = vpop.xlane.xlu1 %277  ;;  %v1354_v42 = vpop.xlane.xlu0 %253 }
 0x1a8   :  { %474 = vbcast.lane.b32.xlu0 %v301_v14, 280  ;;  %v321_v3 = vadd.f32 %v278_v41, %v1354_v42 }
 0x1ab   :  { %v347_v43 = vpop.xlane.xlu1 %346  ;;  %v345_v44 = vpop.xlane.xlu0 %344 }
 0x1ac   :  { %522 = vbcast.lane.b32.xlu0 %v287_v4, 288  ;;  %v377_v13 = vadd.f32 %v347_v43, %v1354_v42  ;;  %v376_v20 = vadd.f32 %v345_v44, %v1352_v40 }
 0x1af   :  { %v1356_v28 = vpop.xlane.xlu1 %279  ;;  %v1358_v45 = vpop.xlane.xlu0 %255 }
 0x1b0   :  { %526 = vbcast.lane.b32.xlu0 %v294_v18, 288  ;;  %v322_v39 = vadd.f32 %v1356_v28, %v1358_v45 }
 0x1b3   :  { %v1360_v46 = vpop.xlane.xlu1 %400  ;;  %v349_v19 = vpop.xlane.xlu0 %348 }
 0x1b4   :  { %478 = vbcast.lane.b32.xlu0 %v308_v22, 280  ;;  %422 = vbcast.lane.b32.xlu1 %v308_v22, 272  ;;  %v378_v38 = vadd.f32 %v349_v19, %v1358_v45 }
 0x1b7   :  { %v1362_v23 = vpop.xlane.xlu1 %257  ;;  %v1364_v47 = vpop.xlane.xlu0 %402 }
 0x1b8   :  { %530 = vbcast.lane.b32.xlu0 %v301_v14, 288  ;;  %534 = vbcast.lane.b32.xlu1 %v308_v22, 288  ;;  %v433_v19 = vadd.f32 %v1364_v47, %v1354_v42 }
 0x1bb   :  { %v351_v48 = vpop.xlane.xlu1 %350  ;;  %v1366_v49 = vpop.xlane.xlu0 %281 }
 0x1bc   :  { %v1369_v50 = vadd.f32 %v351_v48, %v1362_v23 }
 0x1bf   :  { %v1371_v51 = vpop.xlane.xlu1 %456  ;;  %v1373_v52 = vpop.xlane.xlu0 %404 }
 0x1c3   :  { %v407_v53 = vpop.xlane.xlu1 %406  ;;  %v1375_v54 = vpop.xlane.xlu0 %458 }
 0x1c4   :  { %v1378_v55 = vadd.f32 %v407_v53, %v1362_v23  ;;  %v432_v53 = vadd.f32 %v1360_v46, %v1352_v40 }
 0x1c7   :  { %v1380_v56 = vpop.xlane.xlu1 %512  ;;  %v1382_v57 = vpop.xlane.xlu0 %460 }
 0x1cb   :  { %v463_v58 = vpop.xlane.xlu1 %462  ;;  %v1384_v59 = vpop.xlane.xlu0 %514 }
 0x1cc   :  { %v1387_v60 = vadd.f32 %v463_v58, %v1362_v23 }
 0x1cf   :  { %v519_v61 = vpop.xlane.xlu1 %518  ;;  %v1389_v62 = vpop.xlane.xlu0 %516 }
 0x1d0   :  { %v1392_v63 = vadd.f32 %v519_v61, %v1362_v23 }
 0x1d3   :  { %v270_v24 = vpop.xlane.xlu1 %269  ;;  %v1394_v25 = vpop.xlane.xlu0 %267 }
 0x1d7   :  { %v339_v26 = vpop.xlane.xlu1 %338  ;;  %v1396_v27 = vpop.xlane.xlu0 %336 }
 0x1db   :  { %v341_v29 = vpop.xlane.xlu1 %340  ;;  %v1398_v30 = vpop.xlane.xlu0 %271 }
 0x1df   :  { %v395_v32 = vpop.xlane.xlu1 %394  ;;  %v1400_v33 = vpop.xlane.xlu0 %392 }
 0x1e3   :  { %v343_v34 = vpop.xlane.xlu1 %342  ;;  %v1402_v35 = vpop.xlane.xlu0 %273 }
 0x1e7   :  { %v1404_v36 = vpop.xlane.xlu1 %448  ;;  %v1406_v37 = vpop.xlane.xlu0 %396 }
 0x1eb   :  { %v1408_v0 = vpop.xlane.xlu1 %398  ;;  %v1410_v5 = vpop.xlane.xlu0 %450 }
 0x1ef   :  { %v1412_v1 = vpop.xlane.xlu1 %504  ;;  %v1414_v6 = vpop.xlane.xlu0 %452 }
 0x1f3   :  { %v1416_v10 = vpop.xlane.xlu1 %454  ;;  %v1418_v11 = vpop.xlane.xlu0 %506 }
 0x1f7   :  { %v1421_v7 = vpop.permute.xlu1 %289  ;;  %v1423_v15 = vpop.xlane.xlu0 %508 }
 0x1f8   :  { %v324_v16 = vmul.f32 %v320_v2, %v1421_v7 }
 0x1fa   :  { %809 = vperm.xlu0 %1096, %v324_v16  }
 0x1fb   :  { %v1427_v12 = vpop.permute.xlu1 %354  ;;  %v297_v8 = vpop.permute.xlu0 %296 }
 0x1fc   :  { %v1429_v17 = vmul.f32 %v297_v8, %v270_v24  ;;  %v325_v4 = vmul.f32 %v321_v3, %v297_v8  ;;  %v380_v14 = vmul.f32 %v376_v20, %v1427_v12 }
 0x1fe   :  { %812 = vperm.xlu1 %1097, %v325_v4   ;;  %v434_v4 = vadd.f32 %v1373_v52, %v1358_v45 }
 0x1ff   :  { %v359_v18 = vpop.permute.xlu1 %358  ;;  %v1433_v9 = vpop.permute.xlu0 %303 }
 0x200   :  { %v1436_v21 = vmul.f32 %v359_v18, %v339_v26  ;;  %v381_v22 = vmul.f32 %v377_v13, %v359_v18  ;;  %v326_v43 = vmul.f32 %v322_v39, %v1433_v9 }
 0x202   :  { %824 = vperm.xlu0 %1096, %v381_v22   ;;  %821 = vperm.xlu1 %1097, %v380_v14  }
 0x203   :  { %v363_v41 = vpop.permute.xlu0 %362 }
 0x204   :  { %v1442_v44 = vmul.f32 %v363_v41, %v341_v29  ;;  %v382_v48 = vmul.f32 %v378_v38, %v363_v41  ;;  %v323_v29 = vadd.f32 %v1366_v49, %v1362_v23  ;;  %v489_v49 = vadd.f32 %v1375_v54, %v1354_v42 }
 0x205   :  { %v546_v54 = vadd.f32 %v1389_v62, %v1358_v45 }
 0x206   :  { %815 = vperm.xlu1 %1097, %v326_v43   ;;  %827 = vperm.xlu0 %1096, %v382_v48  }
 0x207   :  { %v411_v58 = vpop.permute.xlu0 %410 }
 0x208   :  { %v436_v61 = vmul.f32 %v432_v53, %v411_v58 }
 0x20a   :  { %833 = vperm.xlu1 %1097, %v436_v61  }
 0x20b   :  { %v415_v28 = vpop.permute.xlu0 %414 }
 0x20c   :  { %v1448_v24 = vmul.f32 %v415_v28, %v395_v32  ;;  %v437_v26 = vmul.f32 %v433_v19, %v415_v28  ;;  %v488_v32 = vadd.f32 %v1371_v51, %v1352_v40  ;;  %v545_v51 = vadd.f32 %v1384_v59, %v1354_v42 }
 0x20d   :  { %v544_v19 = vadd.f32 %v1380_v56, %v1352_v40  ;;  %v316_v42 = vmul.f32 %v1421_v7, %v1394_v25  ;;  %v372_v28 = vmul.f32 %v1427_v12, %v1396_v27  ;;  %v428_v56 = vmul.f32 %v411_v58, %v1400_v33 }
 0x20e   :  { %836 = vperm.xlu0 %1096, %v437_v26  }
 0x20f   :  { %v311_v2 = vpop.permute.xlu0 %310 }
 0x210   :  { %v327_v16 = vmul.f32 %v323_v29, %v311_v2  ;;  %v319_v25 = vmul.f32 %v311_v2, %v1402_v35 }
 0x212   :  { %818 = vperm.xlu1 %1097, %v327_v16  }
 0x213   :  { %v367_v46 = vpop.permute.xlu0 %366 }
 0x214   :  { %v375_v3 = vmul.f32 %v367_v46, %v343_v34  ;;  %v383_v8 = vmul.f32 %v1369_v50, %v367_v46  ;;  %v490_v50 = vadd.f32 %v1382_v57, %v1358_v45 }
 0x216   :  { %830 = vperm.xlu0 %1096, %v383_v8  }
 0x217   :  { %v419_v47 = vpop.permute.xlu0 %418 }
 0x218   :  { %v438_v13 = vmul.f32 %v434_v4, %v419_v47 }
 0x21a   :  { %839 = vperm.xlu1 %1097, %v438_v13  }
 0x21b   :  { %v467_v20 = vpop.permute.xlu0 %466 }
 0x21c   :  { %v492_v23 = vmul.f32 %v488_v32, %v467_v20  ;;  %v484_v33 = vmul.f32 %v467_v20, %v1404_v36 }
 0x21e   :  { %845 = vperm.xlu0 %1096, %v492_v23  }
 0x21f   :  { %v471_v18 = vpop.permute.xlu0 %470 }
 0x220   :  { %v493_v34 = vmul.f32 %v489_v49, %v471_v18  ;;  %v485_v27 = vmul.f32 %v471_v18, %v1410_v5 }
 0x222   :  { %848 = vperm.xlu1 %1097, %v493_v34  }
 0x223   :  { %v475_v52 = vpop.permute.xlu0 %474 }
 0x224   :  { %v494_v14 = vmul.f32 %v490_v50, %v475_v52 }
 0x226   :  { %851 = vperm.xlu1 %1097, %v494_v14  }
 0x227   :  { %v523_v22 = vpop.permute.xlu0 %522 }
 0x228   :  { %v548_v59 = vmul.f32 %v544_v19, %v523_v22  ;;  %v540_v5 = vmul.f32 %v523_v22, %v1412_v1 }
 0x22b   :  { %v527_v38 = vpop.permute.xlu0 %526 }
 0x22c   :  { %v549_v39 = vmul.f32 %v545_v51, %v527_v38 }
 0x22e   :  { %860 = vperm.xlu1 %1097, %v549_v39  }
 0x22f   :  { %v479_v41 = vpop.permute.xlu0 %478 }
 0x230   :  { %v511_v43 = vpop.xlane.xlu1 %510  ;;  %v495_v45 = vmul.f32 %v1387_v60, %v479_v41  ;;  %v430_v60 = vmul.f32 %v419_v47, %v1406_v37  ;;  %v487_v7 = vmul.f32 %v479_v41, %v1416_v10 }
 0x233   :  { %v531_v48 = vpop.permute.xlu0 %530 }
 0x234   :  { %v550_v53 = vmul.f32 %v546_v54, %v531_v48  ;;  %v423_v61 = vpop.permute.xlu1 %422  ;;  %v542_v35 = vmul.f32 %v531_v48, %v1423_v15 }
 0x235   :  { %v439_v57 = vmul.f32 %v1378_v55, %v423_v61  ;;  %v318_v55 = vmul.f32 %v1433_v9, %v1398_v30  ;;  %v541_v30 = vmul.f32 %v527_v38, %v1418_v11  ;;  %v431_v37 = vmul.f32 %v423_v61, %v1408_v0 }
 0x236   :  { %863 = vperm.xlu1 %1097, %v550_v53  }
 0x237   :  { %842 = vperm.xlu0 %1096, %v439_v57  }
 0x238   :  { %v535_v62 = vpop.permute.xlu1 %534 }
 0x239   :  { %v551_v40 = vmul.f32 %v1392_v63, %v535_v62  ;;  %v486_v63 = vmul.f32 %v475_v52, %v1414_v6  ;;  %v543_v6 = vmul.f32 %v535_v62, %v511_v43 }
 0x23a   :  { %573 = vperm.xlu1 %1097, %v316_v42  }
 0x23b   :  { %857 = vperm.xlu0 %1096, %v548_v59  }
 0x23e   :  { %585 = vperm.xlu1 %1097, %v372_v28  }
 0x23f   :  { %854 = vperm.xlu0 %1096, %v495_v45  }
 0x242   :  { %579 = vperm.xlu1 %1097, %v318_v55  }
 0x243   :  { %866 = vperm.xlu0 %1096, %v551_v40  }
 0x246   :  { %597 = vperm.xlu1 %1097, %v428_v56  }
 0x247   :  { %576 = vperm.xlu0 %1096, %v1429_v17  }
 0x24a   :  { %582 = vperm.xlu1 %1097, %v319_v25  }
 0x24b   :  { %588 = vperm.xlu0 %1096, %v1436_v21  }
 0x24e   :  { %603 = vperm.xlu1 %1097, %v430_v60  }
 0x24f   :  { %591 = vperm.xlu0 %1096, %v1442_v44  }
 0x252   :  { %612 = vperm.xlu1 %1097, %v485_v27  }
 0x253   :  { %600 = vperm.xlu0 %1096, %v1448_v24  }
 0x256   :  { %615 = vperm.xlu1 %1097, %v486_v63  }
 0x257   :  { %594 = vperm.xlu0 %1096, %v375_v3  }
 0x25a   :  { %624 = vperm.xlu1 %1097, %v541_v30  }
 0x25b   :  { %609 = vperm.xlu0 %1096, %v484_v33  }
 0x25e   :  { %627 = vperm.xlu1 %1097, %v542_v35  }
 0x25f   :  { %606 = vperm.xlu0 %1096, %v431_v37  }
 0x263   :  { %621 = vperm.xlu0 %1096, %v540_v5  }
 0x267   :  { %618 = vperm.xlu0 %1096, %v487_v7  }
 0x26b   :  { %630 = vperm.xlu0 %1096, %v543_v6  }
 0x279   :  { %v810_v17 = vpop.permute.xlu0 %809 }
 0x27a   :  { %v871_v1 = vrot.slane %v810_v17, %v1282_v31 }
 0x27d   :  { %v813_v12 = vpop.permute.xlu1 %812 }
 0x27e   :  { %v875_v15 = vrot.slane %v813_v12, %v1282_v31 }
 0x280   :  { %v948_v24 = vsel %vm714_vm4, %v875_v15, %v871_v1 }
 0x281   :  { %v822_v11 = vpop.permute.xlu1 %821  ;;  %v825_v36 = vpop.permute.xlu0 %824 }
 0x282   :  { %v887_v26 = vrot.slane %v822_v11, %v1282_v31  ;;  %v891_v29 = vrot.slane %v825_v36, %v1282_v31 }
 0x284   :  { %v951_v47 = vsel %vm714_vm4, %v891_v29, %v887_v26 }
 0x285   :  { %v816_v9 = vpop.permute.xlu1 %815  ;;  %v828_v21 = vpop.permute.xlu0 %827 }
 0x286   :  { %v879_v0 = vrot.slane %v816_v9, %v1282_v31  ;;  %v895_v16 = vrot.slane %v828_v21, %v1282_v31 }
 0x288   :  { %v949_v46 = vsel %vm716_vm5, %v879_v0, %v948_v24  ;;  %v952_v32 = vsel %vm716_vm5, %v895_v16, %v951_v47 }
 0x289   :  { %v834_v44 = vpop.permute.xlu1 %833 }
 0x28a   :  { %v903_v51 = vrot.slane %v834_v44, %v1282_v31 }
 0x28d   :  { %v837_v58 = vpop.permute.xlu0 %836 }
 0x28e   :  { %v907_v14 = vrot.slane %v837_v58, %v1282_v31 }
 0x290   :  { %v954_v41 = vsel %vm714_vm4, %v907_v14, %v903_v51 }
 0x291   :  { %v819_v10 = vpop.permute.xlu1 %818 }
 0x292   :  { %v883_v2 = vrot.slane %v819_v10, %v1282_v31 }
 0x294   :  { %v950_v3 = vsel %vm718_vm6, %v883_v2, %v949_v46 }
 0x295   :  { %v831_v8 = vpop.permute.xlu0 %830  ;;  %v968_v4 = vsel %vm737_vm7, %v950_v3, 0.0 }
 0x296   :  { %v899_v13 = vrot.slane %v831_v8, %v1282_v31  ;;  %969 = vadd.xlane.f32.xlu1 %v968_v4 }
 0x298   :  { %v953_v20 = vsel %vm718_vm6, %v899_v13, %v952_v32 }
 0x299   :  { %v971_v23 = vsel %vm737_vm7, %v953_v20, 0.0  ;;  %v840_v49 = vpop.permute.xlu1 %839 }
 0x29a   :  { %972 = vadd.xlane.f32.xlu0 %v971_v23  ;;  %v911_v22 = vrot.slane %v840_v49, %v1282_v31 }
 0x29c   :  { %v955_v54 = vsel %vm716_vm5, %v911_v22, %v954_v41 }
 0x29d   :  { %v846_v52 = vpop.permute.xlu0 %845 }
 0x29e   :  { %v919_v59 = vrot.slane %v846_v52, %v1282_v31 }
 0x2a1   :  { %v849_v18 = vpop.permute.xlu1 %848 }
 0x2a2   :  { %v923_v19 = vrot.slane %v849_v18, %v1282_v31 }
 0x2a4   :  { %v957_v55 = vsel %vm714_vm4, %v923_v19, %v919_v59 }
 0x2a5   :  { %v852_v34 = vpop.permute.xlu1 %851 }
 0x2a6   :  { %v927_v42 = vrot.slane %v852_v34, %v1282_v31 }
 0x2a8   :  { %v958_v25 = vsel %vm716_vm5, %v927_v42, %v957_v55 }
 0x2ad   :  { %v861_v50 = vpop.permute.xlu1 %860 }
 0x2ae   :  { %v939_v40 = vrot.slane %v861_v50, %v1282_v31 }
 0x2b5   :  { %v864_v38 = vpop.permute.xlu1 %863 }
 0x2b6   :  { %v843_v39 = vpop.permute.xlu0 %842  ;;  %v943_v30 = vrot.slane %v864_v38, %v1282_v31 }
 0x2b7   :  { %v915_v43 = vrot.slane %v843_v39, %v1282_v31 }
 0x2b9   :  { %v574_v48 = vpop.permute.xlu1 %573  ;;  %v956_v53 = vsel %vm718_vm6, %v915_v43, %v955_v54 }
 0x2ba   :  { %v858_v61 = vpop.permute.xlu0 %857  ;;  %v974_v57 = vsel %vm737_vm7, %v956_v53, 0.0  ;;  %v637_v17 = vrot.slane %v574_v48, %v1282_v31 }
 0x2bb   :  { %975 = vadd.xlane.f32.xlu0 %v974_v57  ;;  %v935_v28 = vrot.slane %v858_v61, %v1282_v31 }
 0x2bd   :  { %v586_v45 = vpop.permute.xlu1 %585  ;;  %v960_v60 = vsel %vm714_vm4, %v939_v40, %v935_v28 }
 0x2be   :  { %v855_v62 = vpop.permute.xlu0 %854  ;;  %v961_v5 = vsel %vm716_vm5, %v943_v30, %v960_v60  ;;  %v653_v46 = vrot.slane %v586_v45, %v1282_v31 }
 0x2bf   :  { %v931_v56 = vrot.slane %v855_v62, %v1282_v31 }
 0x2c1   :  { %v580_v27 = vpop.permute.xlu1 %579  ;;  %v959_v63 = vsel %vm718_vm6, %v931_v56, %v958_v25 }
 0x2c2   :  { %v867_v33 = vpop.permute.xlu0 %866  ;;  %v977_v35 = vsel %vm737_vm7, %v959_v63, 0.0  ;;  %v645_v9 = vrot.slane %v580_v27, %v1282_v31 }
 0x2c3   :  { %v947_v37 = vrot.slane %v867_v33, %v1282_v31  ;;  %978 = vadd.xlane.f32.xlu1 %v977_v35 }
 0x2c5   :  { %v598_v7 = vpop.permute.xlu1 %597  ;;  %v962_v6 = vsel %vm718_vm6, %v947_v37, %v961_v5 }
 0x2c6   :  { %v577_v12 = vpop.permute.xlu0 %576  ;;  %v980_v11 = vsel %vm737_vm7, %v962_v6, 0.0  ;;  %v669_v18 = vrot.slane %v598_v7, %v1282_v31 }
 0x2c7   :  { %v641_v36 = vrot.slane %v577_v12, %v1282_v31  ;;  %981 = vadd.xlane.f32.xlu0 %v980_v11 }
 0x2c9   :  { %v715_v21 = vsel %vm714_vm4, %v641_v36, %v637_v17  ;;  %v583_v44 = vpop.permute.xlu1 %582 }
 0x2ca   :  { %v649_v15 = vrot.slane %v583_v44, %v1282_v31  ;;  %v589_v0 = vpop.permute.xlu0 %588  ;;  %v717_v1 = vsel %vm716_vm5, %v645_v9, %v715_v21 }
 0x2cb   :  { %v657_v2 = vrot.slane %v589_v0, %v1282_v31 }
 0x2cc   :  { %v719_v58 = vsel %vm718_vm6, %v649_v15, %v717_v1 }
 0x2cd   :  { %v738_v10 = vsel %vm737_vm7, %v719_v58, 0.0  ;;  %v604_v26 = vpop.permute.xlu1 %603  ;;  %v720_v4 = vsel %vm714_vm4, %v657_v2, %v653_v46 }
 0x2ce   :  { %739 = vadd.xlane.f32.xlu1 %v738_v10  ;;  %v592_v24 = vpop.permute.xlu0 %591  ;;  %v677_v52 = vrot.slane %v604_v26, %v1282_v31 }
 0x2cf   :  { %v661_v16 = vrot.slane %v592_v24, %v1282_v31 }
 0x2d1   :  { %v613_v3 = vpop.permute.xlu1 %612  ;;  %v721_v13 = vsel %vm716_vm5, %v661_v16, %v720_v4 }
 0x2d2   :  { %v601_v29 = vpop.permute.xlu0 %600  ;;  %v689_v48 = vrot.slane %v613_v3, %v1282_v31 }
 0x2d3   :  { %v673_v32 = vrot.slane %v601_v29, %v1282_v31 }
 0x2d5   :  { %v616_v34 = vpop.permute.xlu1 %615  ;;  %v723_v50 = vsel %vm714_vm4, %v673_v32, %v669_v18 }
 0x2d6   :  { %v595_v8 = vpop.permute.xlu0 %594  ;;  %v724_v51 = vsel %vm716_vm5, %v677_v52, %v723_v50  ;;  %v693_v57 = vrot.slane %v616_v34, %v1282_v31 }
 0x2d7   :  { %v665_v47 = vrot.slane %v595_v8, %v1282_v31 }
 0x2d9   :  { %v722_v20 = vsel %vm718_vm6, %v665_v47, %v721_v13  ;;  %v625_v38 = vpop.permute.xlu1 %624 }
 0x2da   :  { %v610_v23 = vpop.permute.xlu0 %609  ;;  %v741_v49 = vsel %vm737_vm7, %v722_v20, 0.0  ;;  %v705_v42 = vrot.slane %v625_v38, %v1282_v31 }
 0x2db   :  { %742 = vadd.xlane.f32.xlu0 %v741_v49  ;;  %v685_v39 = vrot.slane %v610_v23, %v1282_v31 }
 0x2dd   :  { %v726_v53 = vsel %vm714_vm4, %v689_v48, %v685_v39  ;;  %v628_v59 = vpop.permute.xlu1 %627 }
 0x2de   :  { %v607_v14 = vpop.permute.xlu0 %606  ;;  %v727_v45 = vsel %vm716_vm5, %v693_v57, %v726_v53  ;;  %v709_v40 = vrot.slane %v628_v59, %v1282_v31 }
 0x2df   :  { %v681_v22 = vrot.slane %v607_v14, %v1282_v31 }
 0x2e1   :  { %v725_v41 = vsel %vm718_vm6, %v681_v22, %v724_v51 }
 0x2e2   :  { %v622_v43 = vpop.permute.xlu0 %621  ;;  %v744_v54 = vsel %vm737_vm7, %v725_v41, 0.0 }
 0x2e3   :  { %745 = vadd.xlane.f32.xlu1 %v744_v54  ;;  %v701_v61 = vrot.slane %v622_v43, %v1282_v31 }
 0x2e5   :  { %v729_v62 = vsel %vm714_vm4, %v705_v42, %v701_v61 }
 0x2e6   :  { %v619_v19 = vpop.permute.xlu0 %618  ;;  %v730_v27 = vsel %vm716_vm5, %v709_v40, %v729_v62 }
 0x2e7   :  { %v697_v28 = vrot.slane %v619_v19, %v1282_v31 }
 0x2e9   :  { %v728_v55 = vsel %vm718_vm6, %v697_v28, %v727_v45 }
 0x2ea   :  { %v631_v56 = vpop.permute.xlu0 %630  ;;  %v747_v25 = vsel %vm737_vm7, %v728_v55, 0.0 }
 0x2eb   :  { %v713_v60 = vrot.slane %v631_v56, %v1282_v31  ;;  %748 = vadd.xlane.f32.xlu0 %v747_v25 }
 0x2ed   :  { %v731_v63 = vsel %vm718_vm6, %v713_v60, %v730_v27 }
 0x2ee   :  { %v750_v30 = vsel %vm737_vm7, %v731_v63, 0.0 }
 0x2ef   :  { %751 = vadd.xlane.f32.xlu1 %v750_v30 }
 0x323   :  { %v970_v35 = vpop.xlane.xlu1 %969 }
 0x324   :  { %v991_v12 = vrot.slane %v970_v35, %v1282_v31 }
 0x327   :  { %v973_v33 = vpop.xlane.xlu0 %972 }
 0x328   :  { %v995_v5 = vrot.slane %v973_v33, %v1282_v31 }
 0x32a   :  { %v1008_v17 = vsel %vm714_vm4, %v995_v5, %v991_v12 }
 0x348   :  { %v976_v37 = vpop.xlane.xlu0 %975 }
 0x349   :  { %v999_v6 = vrot.slane %v976_v37, %v1282_v31 }
 0x34b   :  { %v1009_v9 = vsel %vm716_vm5, %v999_v6, %v1008_v17 }
 0x350   :  { %v979_v7 = vpop.xlane.xlu1 %978 }
 0x351   :  { %v1003_v11 = vrot.slane %v979_v7, %v1282_v31 }
 0x353   :  { %v1010_v44 = vsel %vm718_vm6, %v1003_v11, %v1009_v9 }
 0x354   :  { %v982_v36 = vpop.xlane.xlu0 %981 }
 0x355   :  { %v1007_v21 = vrot.slane %v982_v36, %v1282_v31 }
 0x357   :  { %v1011_v15 = vsel %vm781_vm8, %v1007_v21, %v1010_v44 }
 0x358   :  { %v1013_v0 = vsel %vm784_vm9, %v1011_v15, 0.0 }
 0x359   :  { %1014 = vadd.xlane.f32.xlu0 %v1013_v0 }
 0x35b   :  { %v740_v1 = vpop.xlane.xlu1 %739 }
 0x35c   :  { %v761_v2 = vrot.slane %v740_v1, %v1282_v31 }
 0x368   :  { %v743_v58 = vpop.xlane.xlu0 %742 }
 0x369   :  { %v765_v24 = vrot.slane %v743_v58, %v1282_v31 }
 0x36b   :  { %v778_v46 = vsel %vm714_vm4, %v765_v24, %v761_v2 }
 0x370   :  { %v746_v10 = vpop.xlane.xlu1 %745 }
 0x371   :  { %v769_v29 = vrot.slane %v746_v10, %v1282_v31 }
 0x373   :  { %v779_v8 = vsel %vm716_vm5, %v769_v29, %v778_v46 }
 0x378   :  { %v749_v26 = vpop.xlane.xlu0 %748 }
 0x379   :  { %v773_v16 = vrot.slane %v749_v26, %v1282_v31 }
 0x37b   :  { %v780_v47 = vsel %vm718_vm6, %v773_v16, %v779_v8 }
 0x37c   :  { %v752_v3 = vpop.xlane.xlu1 %751 }
 0x37d   :  { %v777_v4 = vrot.slane %v752_v3, %v1282_v31 }
 0x37f   :  { %v782_v13 = vsel %vm781_vm8, %v777_v4, %v780_v47 }
 0x380   :  { %v785_v32 = vsel %vm784_vm9, %v782_v13, 0.0 }
 0x381   :  { %786 = vadd.xlane.f32.xlu1 %v785_v32 }
 0x3e6   :  { %v1015_v20 = vpop.xlane.xlu0 %1014 }
 0x3e7   :  { %v1018_v23 = vadd.f32 0.1, %v1015_v20 }
 0x3e9   :  { %1098 = vrcp.f32 %v1018_v23 }
 0x3f3   :  { %v1099_v50 = vpop.eup %1098 }
 0x40e   :  { %v787_v49 = vpop.xlane.xlu1 %786 }
 0x40f   :  { %v1016_v18 = vmul.f32 2.0, %v787_v49 }
 0x411   :  { %v1017_v34 = vadd.f32 0.1, %v1016_v18 }
 0x413   :  { %v1020_v52 = vmul.f32 %v1099_v50, %v1017_v34 }
 0x415   :  { %v1022_v14 = vsel %vm1021_vm10, %v1020_v52, 0.0 }
 0x416   :  { %1023 = vadd.xlane.f32.xlu0 %v1022_v14 }
 0x4a3   :  { %v1024_v31 = vpop.xlane.xlu0 %1023 }
 0x4a4   :  { %v1025_v22 = vrot.slane %v1024_v31, 4 }
 0x4a6   :  { %v1026_v51 = vadd.f32 %v1025_v22, %v1024_v31 }
 0x4a8   :  { %v1027_v38 = vrot.slane %v1026_v51, 2 }
 0x4aa   :  { %v1028_v39 = vadd.f32 %v1027_v38, %v1026_v51 }
 0x4ac   :  { %v1029_v41 = vrot.slane %v1028_v39, 1 }
 0x4ae   :  { %v1030_v43 = vadd.f32 %v1029_v41, %v1028_v39 }
 0x4b0   :  { %1085 = vpush %v1030_v43 }
 0x4e1   :  { %s1086_s13 = spop %1085 }
 0x4e2   :  { %s1032_s14 = ssub.f32 5.0, %s1086_s13 }
 0x4e4   :  { %s1033_s15 = smul.f32 3.0, %s1032_s14 }
 0x4e6   :  { %s1034_s16 = sadd.f32 %s1033_s15, %s234_s1 }
 0x4e8   :  { %s1035_s17 = smul.f32 0.2, %s1034_s16 }
 0x4ea   :  { %1037 = sst [smem:[#allocation5]] %s1035_s17 }
 0x4eb   :  { %1109 = shalt.err (!%p1106_p2)
}
 0x4ec   :  { %s1118_s25 = smov [#allocation5]  }
 0x4ed   :  { %1045 = dma.smem_to_hbm %s1118_s25, 16, %s1609_s4, [#allocation6]  }
 0x4ee   :  { %1114 = dma.done.wait [#allocation6], 16  }
 0x4ef   :  { %1115 = vsyncadd [#allocation6], 4294967280 }
 0x4f0   :  { %1049 = sfence }
 0x4f1   :  { %1050 = vsyncpa [#allocation6], 1 }
 0x4f2   :  { %1051 = vsyncmov [#allocation4] }
 0x4f5   :  { %s1052_s28 = vpop.sfrf %1051 }
 0x4f6   :  { %p1081_p3 = scmp.ne.s32.totalorder %s1052_s28, 0 }
 0x4f8   :  { %1056 = shalt.err (%p1081_p3)  }
 0x4f9   :  { %1058 = vsyncmov [#allocation4 + $0x1] }
 0x4fc   :  { %s1059_s29 = vpop.sfrf %1058 }
 0x4fd   :  { %p1082_p4 = scmp.ne.s32.totalorder %s1059_s29, 0 }
 0x4ff   :  { %1063 = shalt.err (%p1082_p4)  }

</bundles_post_ra>
